<compile_context>
chip_gen: v6e
topology: v6e:2x2x1
jax: 0.10.0
libtpu: 0.0.40
codegen_flags: <defaults>
</compile_context>

<pallas_src>
import functools

import jax
import jax.numpy as jnp
from jax.experimental import pallas as pl
from jax.experimental.pallas import tpu as pltpu


def _wce_kernel(pred_ref, target_ref, weight_ref, out_ref,
                num_acc, den_acc, *, n_rows, tile_n, tiles_per_split):
    s = pl.program_id(0)          # core-split index   ("parallel")
    i = pl.program_id(1)          # tile index within split ("arbitrary")

    @pl.when(i == 0)
    def _init():
        num_acc[...] = jnp.zeros_like(num_acc)
        den_acc[...] = jnp.zeros_like(den_acc)

    pred = pred_ref[...].astype(jnp.float32)      # (tile_n, C) logits, f32 in-kernel
    tgt = target_ref[...]                         # (tile_n, 1) int32 class indices
    w = weight_ref[...].astype(jnp.float32)       # (1, C) per-class weights

    # numerically stable log-sum-exp along the class (lane) axis
    m = jnp.max(pred, axis=-1, keepdims=True)
    z = pred - m
    lse = jnp.log(jnp.sum(jnp.exp(z), axis=-1, keepdims=True))          # (tile_n, 1)

    # gather at the target class via masked selects; the class iota is (1, C)
    # and broadcasts against the (tile_n, 1) targets (no full-tile int32 temp)
    col = jax.lax.broadcasted_iota(jnp.int32, (1, z.shape[-1]), 1)      # (1, C)
    hit = col == tgt                                                    # (tile_n, C)
    picked_z = jnp.sum(jnp.where(hit, z, 0.0), axis=-1, keepdims=True)  # (tile_n, 1)
    picked_w = jnp.sum(jnp.where(hit, w, 0.0), axis=-1, keepdims=True)  # (tile_n, 1)
    picked_logp = picked_z - lse                                        # (tile_n, 1)

    # mask out padded rows (partial last tile / redundant clamped tiles)
    t = s * tiles_per_split + i
    row = jax.lax.broadcasted_iota(jnp.int32, picked_logp.shape, 0) + t * tile_n
    valid = row < n_rows
    nll = jnp.where(valid, -picked_w * picked_logp, 0.0)
    wts = jnp.where(valid, picked_w, 0.0)

    num_acc[...] += jnp.sum(nll, keepdims=True)
    den_acc[...] += jnp.sum(wts, keepdims=True)

    @pl.when(i == pl.num_programs(1) - 1)
    def _finalize():
        # lane-dense (1, 8, 128) partial block: sublane 0 = weighted NLL sum,
        # sublane 1 = weight sum. The final divide happens in the wrapper.
        srow = jax.lax.broadcasted_iota(jnp.int32, out_ref.shape, 1)
        out_ref[...] = jnp.where(
            srow == 0, num_acc[...].reshape(1, 1, 1),
            jnp.where(srow == 1, den_acc[...].reshape(1, 1, 1),
                      jnp.float32(0.0)))


def _vmem_capacity_bytes():
    try:
        return int(pltpu.get_tpu_info().vmem_capacity_bytes)
    except Exception:
        return 64 * 1024 * 1024   # conservative fallback (v7x per-core physical VMEM)


def weighted_cross_entropy_loss(pred, target, weight=None, *, tile_rows=None):
    """pred: (N, C) logits (any float dtype); target: (N,) int; weight: (C,) or None."""
    n, c = pred.shape
    if weight is None:
        weight = jnp.ones((c,), dtype=jnp.float32)   # torch.ones(pred.size(1)) default
    weight = weight.astype(jnp.float32).reshape(1, c)
    target = target.astype(jnp.int32).reshape(n, 1)
    # NOTE: pred intentionally NOT upcast here -- it is DMA'd in its native dtype.

    itemsize = jnp.dtype(pred.dtype).itemsize
    sublane = max(8, 32 // itemsize)          # 8 f32, 16 bf16/f16, 32 int8/fp8

    vmem_cap = _vmem_capacity_bytes()
    # scoped-VMEM target: ~48 MiB on v7x (64 MiB physical), ~96 MiB on v5e/v6e (128 MiB)
    vmem_limit = int(min((vmem_cap * 3) // 4, 96 * 1024 * 1024))

    if tile_rows is None:
        # In-VMEM working-set budget per row (lane dim padded to 128 in VMEM):
        #   double-buffered pred tile + ~3 f32 temporaries + double-buffered targets.
        budget = (vmem_limit * 2) // 3
        c_pad = ((c + 127) // 128) * 128
        per_row = c_pad * (2 * itemsize + 12) + 2 * 128 * 4
        tile_rows = max(sublane, budget // per_row)
    tile_n = min(n, int(tile_rows))
    if tile_n >= sublane:
        tile_n = (tile_n // sublane) * sublane   # dtype-native sublane multiple

    num_tiles = pl.cdiv(n, tile_n)
    num_splits = 2 if num_tiles >= 2 else 1      # spread N-tiles across v7x's 2 TCs
    tiles_per_split = pl.cdiv(num_tiles, num_splits)
    grid = (num_splits, tiles_per_split)

    def data_map(s, i):
        # clamp so redundant trailing steps of the split re-read the last real
        # tile; their rows are masked out in-kernel.
        return (jnp.minimum(s * tiles_per_split + i, num_tiles - 1), 0)

    kernel = functools.partial(_wce_kernel, n_rows=n, tile_n=tile_n,
                               tiles_per_split=tiles_per_split)

    cost = pl.CostEstimate(
        flops=6 * n * c,
        transcendentals=n * c + n,
        bytes_accessed=n * c * itemsize + n * 4 + c * 4 + num_splits * 8 * 128 * 4,
    )

    partials = pl.pallas_call(
        kernel,
        out_shape=jax.ShapeDtypeStruct((num_splits, 8, 128), jnp.float32),
        grid_spec=pltpu.PrefetchScalarGridSpec(
            num_scalar_prefetch=0,
            grid=grid,
            in_specs=[
                pl.BlockSpec((tile_n, c), data_map),          # logits: tiled over N
                pl.BlockSpec((tile_n, 1), data_map),          # targets: tiled over N
                pl.BlockSpec((1, c), lambda s, i: (0, 0)),    # weights: grid-resident
            ],
            out_specs=pl.BlockSpec((1, 8, 128), lambda s, i: (s, 0, 0)),
            scratch_shapes=[
                pltpu.VMEM((1, 1), jnp.float32),   # running weighted NLL sum
                pltpu.VMEM((1, 1), jnp.float32),   # running weight sum
            ],
        ),
        compiler_params=pltpu.CompilerParams(
            dimension_semantics=("parallel", "arbitrary"),
            vmem_limit_bytes=vmem_limit,
        ),
        cost_estimate=cost,
    )(pred, target, weight)

    num = jnp.sum(partials[:, 0, 0])
    den = jnp.sum(partials[:, 1, 0])
    # matches torch: if all selected weights are zero this is 0/0 -> nan
    return num / den


def _reference(pred, target, weight):
    logp = jax.nn.log_softmax(pred.astype(jnp.float32), axis=-1)
    picked = jnp.take_along_axis(logp, target[:, None], axis=-1)[:, 0]
    wt = weight[target]
    return jnp.sum(-wt * picked) / jnp.sum(wt)


if __name__ == "__main__":
    key = jax.random.PRNGKey(0)
    k1, k2, k3, k4 = jax.random.split(key, 4)

    # small shapes consistent with the module's forward: (N, C) logits, (N,) labels
    N, C = 16, 4
    pred = jax.random.normal(k1, (N, C), dtype=jnp.float32)
    target = jax.random.randint(k2, (N,), 0, C, dtype=jnp.int32)
    weight = jnp.array([0.5, 1.0, 2.0, 1.5], dtype=jnp.float32)

    loss = weighted_cross_entropy_loss(pred, target, weight)
    jax.block_until_ready(loss)
    ref = _reference(pred, target, weight)
    assert jnp.allclose(loss, ref, atol=1e-5, rtol=1e-5), (loss, ref)

    # weight=None (all-ones) default path
    loss_unw = weighted_cross_entropy_loss(pred, target, None)
    jax.block_until_ready(loss_unw)
    ref_unw = _reference(pred, target, jnp.ones((C,), jnp.float32))
    assert jnp.allclose(loss_unw, ref_unw, atol=1e-5, rtol=1e-5), (loss_unw, ref_unw)

    # multi-tile grid, even tile count, partial (row-masked) last tile, odd C
    N2, C2 = 1000, 37
    pred2 = jax.random.normal(k3, (N2, C2), dtype=jnp.float32)
    target2 = jax.random.randint(k4, (N2,), 0, C2, dtype=jnp.int32)
    weight2 = jnp.linspace(0.5, 2.0, C2, dtype=jnp.float32)
    loss2 = weighted_cross_entropy_loss(pred2, target2, weight2, tile_rows=192)
    jax.block_until_ready(loss2)
    ref2 = _reference(pred2, target2, weight2)
    assert jnp.allclose(loss2, ref2, atol=1e-4, rtol=1e-4), (loss2, ref2)

    # odd tile count -> exercises the clamped redundant tile of the 2-way split
    loss2b = weighted_cross_entropy_loss(pred2, target2, weight2, tile_rows=144)
    jax.block_until_ready(loss2b)
    assert jnp.allclose(loss2b, ref2, atol=1e-4, rtol=1e-4), (loss2b, ref2)

    # auto tile sizing (single big tile at this N)
    loss2c = weighted_cross_entropy_loss(pred2, target2, weight2)
    jax.block_until_ready(loss2c)
    assert jnp.allclose(loss2c, ref2, atol=1e-4, rtol=1e-4), (loss2c, ref2)

    # bf16 logits stay bf16 across HBM (kernel casts to f32 internally)
    pred_bf16 = pred2.astype(jnp.bfloat16)
    loss_bf16 = weighted_cross_entropy_loss(pred_bf16, target2, weight2, tile_rows=192)
    jax.block_until_ready(loss_bf16)
    ref_bf16 = _reference(pred_bf16.astype(jnp.float32), target2, weight2)
    assert jnp.allclose(loss_bf16, ref_bf16, atol=1e-3, rtol=1e-3), (loss_bf16, ref_bf16)

    print("KERNEL_OK")
</pallas_src>

<mosaic_0001>
module attributes {stable_mosaic.version = 11 : i64} {
  func.func @_wce_kernel(%arg0: i32, %arg1: i32, %arg2: memref<16x4xf32, #tpu.memory_space<vmem>>, %arg3: memref<16x1xi32, #tpu.memory_space<vmem>>, %arg4: memref<1x4xf32, #tpu.memory_space<vmem>>, %arg5: memref<1x8x128xf32, #tpu.memory_space<vmem>>, %arg6: memref<1x1xf32, #tpu.memory_space<vmem>>, %arg7: memref<1x1xf32, #tpu.memory_space<vmem>>) attributes {dimension_semantics = [#tpu.dimension_semantics<parallel>, #tpu.dimension_semantics<arbitrary>], iteration_bounds = array<i64: 1, 1>, scalar_prefetch = 0 : i64, scratch_operands = 2 : i64, tpu.core_type = #tpu.core_type<tc>, window_params = [{transform_indices = @transform_0, window_bounds = array<i64: 16, 4>}, {transform_indices = @transform_1, window_bounds = array<i64: 16, 1>}, {pipeline_mode = #tpu.pipeline_mode<synchronous>, transform_indices = @transform_2, window_bounds = array<i64: 1, 4>}, {transform_indices = @transform_3, window_bounds = array<i64: 1, 8, 128>}]} {
    %c0_i32 = arith.constant 0 : i32
    %0 = arith.cmpi eq, %arg1, %c0_i32 : i32
    %1 = arith.extui %0 : i1 to i32
    %c0_i32_0 = arith.constant 0 : i32
    %2 = arith.cmpi ne, %1, %c0_i32_0 : i32
    scf.if %2 {
      %cst_27 = arith.constant 0.000000e+00 : f32
      %63 = vector.broadcast %cst_27 : f32 to vector<1x1xf32>
      %c0_28 = arith.constant 0 : index
      %c0_29 = arith.constant 0 : index
      %64 = vector.load %arg6[%c0_28, %c0_29] : memref<1x1xf32, #tpu.memory_space<vmem>>, vector<1x1xf32>
      tpu.vector_store %arg6[%c0_28, %c0_29], %63 {strides = array<i32>} : memref<1x1xf32, #tpu.memory_space<vmem>>, vector<1x1xf32>,
      %cst_30 = arith.constant 0.000000e+00 : f32
      %65 = vector.broadcast %cst_30 : f32 to vector<1x1xf32>
      %c0_31 = arith.constant 0 : index
      %c0_32 = arith.constant 0 : index
      %66 = vector.load %arg7[%c0_31, %c0_32] : memref<1x1xf32, #tpu.memory_space<vmem>>, vector<1x1xf32>
      tpu.vector_store %arg7[%c0_31, %c0_32], %65 {strides = array<i32>} : memref<1x1xf32, #tpu.memory_space<vmem>>, vector<1x1xf32>,
    } else {
    }
    %c0 = arith.constant 0 : index
    %c0_1 = arith.constant 0 : index
    %3 = vector.load %arg2[%c0, %c0_1] : memref<16x4xf32, #tpu.memory_space<vmem>>, vector<16x4xf32>
    %c0_2 = arith.constant 0 : index
    %c0_3 = arith.constant 0 : index
    %4 = vector.load %arg3[%c0_2, %c0_3] : memref<16x1xi32, #tpu.memory_space<vmem>>, vector<16x1xi32>
    %c0_4 = arith.constant 0 : index
    %c0_5 = arith.constant 0 : index
    %5 = vector.load %arg4[%c0_4, %c0_5] : memref<1x4xf32, #tpu.memory_space<vmem>>, vector<1x4xf32>
    %cst = arith.constant dense<0xFF800000> : vector<16xf32>
    %6 = vector.multi_reduction <maximumf>, %3, %cst [1] : vector<16x4xf32> to vector<16xf32>
    %7 = vector.shape_cast %6 : vector<16xf32> to vector<16x1xf32>
    %8 = vector.broadcast %7 : vector<16x1xf32> to vector<16x4xf32>
    %9 = arith.subf %3, %8 : vector<16x4xf32>
    %10 = math.exp %9 : vector<16x4xf32>
    %cst_6 = arith.constant dense<0.000000e+00> : vector<16xf32>
    %11 = vector.multi_reduction <add>, %10, %cst_6 [1] : vector<16x4xf32> to vector<16xf32>
    %12 = vector.shape_cast %11 : vector<16xf32> to vector<16x1xf32>
    %13 = math.log %12 : vector<16x1xf32>
    %14 = tpu.iota {dimensions = array<i32: 1>} : vector<1x4xi32>
    %15 = vector.broadcast %14 : vector<1x4xi32> to vector<16x4xi32>
    %16 = vector.broadcast %4 : vector<16x1xi32> to vector<16x4xi32>
    %17 = arith.cmpi eq, %15, %16 : vector<16x4xi32>
    %cst_7 = arith.constant 0.000000e+00 : f32
    %18 = vector.broadcast %cst_7 : f32 to vector<16x4xf32>
    %19 = arith.select %17, %9, %18 : vector<16x4xi1>, vector<16x4xf32>
    %cst_8 = arith.constant dense<0.000000e+00> : vector<16xf32>
    %20 = vector.multi_reduction <add>, %19, %cst_8 [1] : vector<16x4xf32> to vector<16xf32>
    %21 = vector.shape_cast %20 : vector<16xf32> to vector<16x1xf32>
    %cst_9 = arith.constant 0.000000e+00 : f32
    %22 = vector.shape_cast %5 : vector<1x4xf32> to vector<1x4xf32>
    %23 = vector.broadcast %22 : vector<1x4xf32> to vector<16x4xf32>
    %24 = vector.broadcast %cst_9 : f32 to vector<16x4xf32>
    %25 = arith.select %17, %23, %24 : vector<16x4xi1>, vector<16x4xf32>
    %cst_10 = arith.constant dense<0.000000e+00> : vector<16xf32>
    %26 = vector.multi_reduction <add>, %25, %cst_10 [1] : vector<16x4xf32> to vector<16xf32>
    %27 = vector.shape_cast %26 : vector<16xf32> to vector<16x1xf32>
    %28 = arith.subf %21, %13 : vector<16x1xf32>
    %c1_i32 = arith.constant 1 : i32
    %29 = arith.muli %arg0, %c1_i32 : i32
    %30 = arith.addi %29, %arg1 : i32
    %31 = tpu.iota {dimensions = array<i32: 0>} : vector<16x1xi32>
    %c16_i32 = arith.constant 16 : i32
    %32 = arith.muli %30, %c16_i32 : i32
    %33 = vector.broadcast %32 : i32 to vector<16x1xi32>
    %34 = arith.addi %31, %33 : vector<16x1xi32>
    %c16_i32_11 = arith.constant 16 : i32
    %35 = vector.broadcast %c16_i32_11 : i32 to vector<16x1xi32>
    %36 = arith.cmpi slt, %34, %35 : vector<16x1xi32>
    %cst_12 = arith.constant 0.000000e+00 : f32
    %37 = vector.broadcast %cst_12 : f32 to vector<16x1xf32>
    %38 = arith.subf %37, %27 : vector<16x1xf32>
    %39 = arith.mulf %38, %28 : vector<16x1xf32>
    %cst_13 = arith.constant 0.000000e+00 : f32
    %40 = vector.broadcast %cst_13 : f32 to vector<16x1xf32>
    %41 = arith.select %36, %39, %40 : vector<16x1xi1>, vector<16x1xf32>
    %cst_14 = arith.constant 0.000000e+00 : f32
    %42 = vector.broadcast %cst_14 : f32 to vector<16x1xf32>
    %43 = arith.select %36, %27, %42 : vector<16x1xi1>, vector<16x1xf32>
    %c0_15 = arith.constant 0 : index
    %c0_16 = arith.constant 0 : index
    %44 = vector.load %arg6[%c0_15, %c0_16] : memref<1x1xf32, #tpu.memory_space<vmem>>, vector<1x1xf32>
    %45 = vector.shape_cast %41 : vector<16x1xf32> to vector<1x16x1xf32>
    %cst_17 = arith.constant dense<0.000000e+00> : vector<1xf32>
    %46 = vector.multi_reduction <add>, %45, %cst_17 [1, 2] : vector<1x16x1xf32> to vector<1xf32>
    %47 = vector.shape_cast %46 : vector<1xf32> to vector<1x1x1xf32>
    %48 = vector.extract %47[0, 0, 0] : f32 from vector<1x1x1xf32>
    %49 = vector.broadcast %48 : f32 to vector<1x1xf32>
    %50 = arith.addf %44, %49 : vector<1x1xf32>
    %c0_18 = arith.constant 0 : index
    %c0_19 = arith.constant 0 : index
    %51 = vector.load %arg6[%c0_18, %c0_19] : memref<1x1xf32, #tpu.memory_space<vmem>>, vector<1x1xf32>
    tpu.vector_store %arg6[%c0_18, %c0_19], %50 {strides = array<i32>} : memref<1x1xf32, #tpu.memory_space<vmem>>, vector<1x1xf32>,
    %c0_20 = arith.constant 0 : index
    %c0_21 = arith.constant 0 : index
    %52 = vector.load %arg7[%c0_20, %c0_21] : memref<1x1xf32, #tpu.memory_space<vmem>>, vector<1x1xf32>
    %53 = vector.shape_cast %43 : vector<16x1xf32> to vector<1x16x1xf32>
    %cst_22 = arith.constant dense<0.000000e+00> : vector<1xf32>
    %54 = vector.multi_reduction <add>, %53, %cst_22 [1, 2] : vector<1x16x1xf32> to vector<1xf32>
    %55 = vector.shape_cast %54 : vector<1xf32> to vector<1x1x1xf32>
    %56 = vector.extract %55[0, 0, 0] : f32 from vector<1x1x1xf32>
    %57 = vector.broadcast %56 : f32 to vector<1x1xf32>
    %58 = arith.addf %52, %57 : vector<1x1xf32>
    %c0_23 = arith.constant 0 : index
    %c0_24 = arith.constant 0 : index
    %59 = vector.load %arg7[%c0_23, %c0_24] : memref<1x1xf32, #tpu.memory_space<vmem>>, vector<1x1xf32>
    tpu.vector_store %arg7[%c0_23, %c0_24], %58 {strides = array<i32>} : memref<1x1xf32, #tpu.memory_space<vmem>>, vector<1x1xf32>,
    %c0_i32_25 = arith.constant 0 : i32
    %60 = arith.cmpi eq, %arg1, %c0_i32_25 : i32
    %61 = arith.extui %60 : i1 to i32
    %c0_i32_26 = arith.constant 0 : i32
    %62 = arith.cmpi ne, %61, %c0_i32_26 : i32
    scf.if %62 {
      %63 = tpu.iota {dimensions = array<i32: 1>} : vector<1x8x128xi32>
      %c0_i32_27 = arith.constant 0 : i32
      %64 = vector.broadcast %c0_i32_27 : i32 to vector<1x8x128xi32>
      %65 = arith.cmpi eq, %63, %64 : vector<1x8x128xi32>
      %c0_28 = arith.constant 0 : index
      %c0_29 = arith.constant 0 : index
      %66 = vector.load %arg6[%c0_28, %c0_29] : memref<1x1xf32, #tpu.memory_space<vmem>>, vector<1x1xf32>
      %67 = vector.shape_cast %66 : vector<1x1xf32> to vector<1x1x1xf32>
      %c1_i32_30 = arith.constant 1 : i32
      %68 = vector.broadcast %c1_i32_30 : i32 to vector<1x8x128xi32>
      %69 = arith.cmpi eq, %63, %68 : vector<1x8x128xi32>
      %c0_31 = arith.constant 0 : index
      %c0_32 = arith.constant 0 : index
      %70 = vector.load %arg7[%c0_31, %c0_32] : memref<1x1xf32, #tpu.memory_space<vmem>>, vector<1x1xf32>
      %71 = vector.shape_cast %70 : vector<1x1xf32> to vector<1x1x1xf32>
      %cst_33 = arith.constant 0.000000e+00 : f32
      %72 = vector.shape_cast %71 : vector<1x1x1xf32> to vector<1x1x1xf32>
      %73 = vector.broadcast %72 : vector<1x1x1xf32> to vector<1x8x128xf32>
      %74 = vector.broadcast %cst_33 : f32 to vector<1x8x128xf32>
      %75 = arith.select %69, %73, %74 : vector<1x8x128xi1>, vector<1x8x128xf32>
      %76 = vector.shape_cast %67 : vector<1x1x1xf32> to vector<1x1x1xf32>
      %77 = vector.broadcast %76 : vector<1x1x1xf32> to vector<1x8x128xf32>
      %78 = arith.select %65, %77, %75 : vector<1x8x128xi1>, vector<1x8x128xf32>
      %c0_34 = arith.constant 0 : index
      %c0_35 = arith.constant 0 : index
      %c0_36 = arith.constant 0 : index
      %79 = vector.load %arg5[%c0_34, %c0_35, %c0_36] : memref<1x8x128xf32, #tpu.memory_space<vmem>>, vector<1x8x128xf32>
      tpu.vector_store %arg5[%c0_34, %c0_35, %c0_36], %78 {strides = array<i32>} : memref<1x8x128xf32, #tpu.memory_space<vmem>>, vector<1x8x128xf32>,
    } else {
    }
    return
  }
  func.func @transform_0(%arg0: i32, %arg1: i32) -> (i32, i32) {
    %c1_i32 = arith.constant 1 : i32
    %0 = arith.muli %arg0, %c1_i32 : i32
    %1 = arith.addi %0, %arg1 : i32
    %c0_i32 = arith.constant 0 : i32
    %2 = arith.minsi %1, %c0_i32 : i32
    %c0_i32_0 = arith.constant 0 : i32
    %c0_i32_1 = arith.constant 0 : i32
    return %2, %c0_i32_0 : i32, i32
  }
  func.func @transform_1(%arg0: i32, %arg1: i32) -> (i32, i32) {
    %c1_i32 = arith.constant 1 : i32
    %0 = arith.muli %arg0, %c1_i32 : i32
    %1 = arith.addi %0, %arg1 : i32
    %c0_i32 = arith.constant 0 : i32
    %2 = arith.minsi %1, %c0_i32 : i32
    %c0_i32_0 = arith.constant 0 : i32
    %c0_i32_1 = arith.constant 0 : i32
    return %2, %c0_i32_0 : i32, i32
  }
  func.func @transform_2(%arg0: i32, %arg1: i32) -> (i32, i32) {
    %c0_i32 = arith.constant 0 : i32
    %c0_i32_0 = arith.constant 0 : i32
    %c0_i32_1 = arith.constant 0 : i32
    return %c0_i32, %c0_i32_0 : i32, i32
  }
  func.func @transform_3(%arg0: i32, %arg1: i32) -> (i32, i32, i32) {
    %c0_i32 = arith.constant 0 : i32
    %c0_i32_0 = arith.constant 0 : i32
    %c0_i32_1 = arith.constant 0 : i32
    return %arg0, %c0_i32, %c0_i32_0 : i32, i32, i32
  }
}

</mosaic_0001>

<bundles_post_ra>
// kernel: tpu_custom_call.1
= control target key start
LH: loop header
LB: loop body
LE: loop exit
PB: predicated region body
PF: predicated region fallthrough
CT: control target
= control target key end

     0   :  { %vm91_vm0 = vcmask 31744   ;;  %v296_v4 = vmov 0   ;;  %s353_s0 = inlined_call_operand.vmem [shape: f32[16,4], index: 0, kind: input, shape index: {}]   ;;  %s354_s1 = inlined_call_operand.vmem [shape: s32[16,1], index: 1, kind: input, shape index: {}]   ;;  %s355_s2 = inlined_call_operand.vmem [shape: f32[1,4], index: 2, kind: input, shape index: {}]   ;;  %s356_s3 = inlined_call_operand.hbm [shape: f32[1,8,128], index: 3, kind: output, shape index: {}]  }
   0x1   :  { %v86_v0 = vld [vmem:[%s353_s0] sm:$0xff]  ;;  %v87_v1 = vld [vmem:[%s353_s0 + $0x8] sm:$0xff]  ;;  %264 = vset.pattern.permute.xlu1 %v296_v4  ;;  %265 = vset.pattern.permute.xlu0 %v296_v4 }
   0x2   :  { %v88_v2 = vld [vmem:[%s354_s1] sm:$0xff]  ;;  %v92_v3 = vsel %vm91_vm0, %v86_v0, -inf }
   0x3   :  { %8 = vsyncpa [#allocation5], 0  ;;  %93 = vmax.xlane.f32.xlu0 %v92_v3  ;;  %117 = vperm.xlu1 %264, %v88_v2   ;;  %v95_v5 = vsel %vm91_vm0, %v87_v1, -inf  ;;  %v89_v6 = vld [vmem:[%s354_s1 + $0x8] sm:$0xff]  ;;  %v114_v13 = vlaneseq  ;;  %v254_v24 = vld [vmem:[%s355_s2] ss:$0 sm:$0xff] }
   0x4   :  { %vm167_vm3 = vcmask 7168   ;;  %vm83_vm4 = vcmask 0   ;;  %v297_v52 = vmov 0.0   ;;  %s298_s21 = smov [#allocation4]  }
   0x5   :  { %v115_v15 = vand.u32 127, %v114_v13  ;;  %84 = vst.msk [vmem:[#allocation2] sm:$0x1] %vm83_vm4, %v297_v52  ;;  %85 = vst.msk [vmem:[#allocation3] sm:$0x1] %vm83_vm4, %v297_v52  ;;  %s234_s22 = sshll.u32 %s298_s21, 4  ;;  %s235_s22 = int_to_ptr.vmem [resolvable:$true] %s234_s22 }
   0x6   :  { %s274_s23 = scalar_lea.vmem %s235_s22, 128  ;;  %p279_p1 = scmp.lt.s32.totalorder %s235_s22, %s235_s22 }
   0x7   :  { %96 = vmax.xlane.f32.xlu0 %v95_v5  ;;  %120 = vperm.xlu1 %264, %v89_v6   ;;  %p275_p0 = scmp.ne.s32.totalorder %s235_s22, %s274_s23  ;;  %p280_p2 = scmp.lt.s32.totalorder %s274_s23, %s274_s23 }
   0x9   :  { %p281_p3 = por %p280_p2, %p279_p1 }
   0xb   :  { %p282_p4 = pnand %p281_p3, %p275_p0 }
   0xc   :  { %v166_v3 = vld [vmem:[#allocation2] sm:$0x1]  ;;  %v184_v6 = vld [vmem:[#allocation3] sm:$0x1] }
  0x7e   :  { %v118_v14 = vpop.permute.xlu1 %117 }
  0x7f   :  { %vm122_vm1 = vcmp.eq.s32.totalorder %v115_v15, %v118_v14 }
  0x80   :  { %v138_v26 = vsel %vm122_vm1, %v254_v24, 0.0 }
  0x81   :  { %v140_v27 = vsel %vm91_vm0, %v138_v26, 0.0 }
  0x82   :  { %v121_v17 = vpop.permute.xlu1 %120 }
  0x83   :  { %vm123_vm2 = vcmp.eq.s32.totalorder %v115_v15, %v121_v17 }
  0x84   :  { %v139_v28 = vsel %vm123_vm2, %v254_v24, 0.0 }
  0x85   :  { %v143_v29 = vsel %vm91_vm0, %v139_v28, 0.0 }
  0x8c   :  { %v94_v7 = vpop.xlane.xlu0 %93 }
  0x8d   :  { %v98_v8 = vsub.f32 %v86_v0, %v94_v7 }
  0x8f   :  { %v100_v9 = vmul.f32 1.442695, %v98_v8  ;;  %v124_v19 = vsel %vm122_vm1, %v98_v8, 0.0 }
  0x90   :  { %v97_v10 = vpop.xlane.xlu0 %96  ;;  %v126_v21 = vsel %vm91_vm0, %v124_v19, 0.0 }
  0x91   :  { %266 = vpow2.f32 %v100_v9  ;;  %v99_v11 = vsub.f32 %v87_v1, %v97_v10 }
  0x93   :  { %v102_v12 = vmul.f32 1.442695, %v99_v11  ;;  %v125_v23 = vsel %vm123_vm2, %v99_v11, 0.0  ;;  %v150_v11 = vshrl.u32 %v114_v13, 7 }
  0x94   :  { %v129_v25 = vsel %vm91_vm0, %v125_v23, 0.0 }
  0x95   :  { %268 = vpow2.f32 %v102_v12  ;;  %vm205_vm5 = vcmp.eq.s32.totalorder %v150_v11, 1  ;;  %vm203_vm6 = vcmp.eq.s32.totalorder %v150_v11, 0 }
  0x9e   :  { %v267_v16 = vpop.eup %266 }
  0x9f   :  { %v104_v18 = vsel %vm91_vm0, %v267_v16, 0.0 }
  0xa0   :  { %105 = vadd.xlane.f32.xlu0 %v104_v18 }
  0xa2   :  { %v269_v20 = vpop.eup %268 }
  0xa3   :  { %v107_v22 = vsel %vm91_vm0, %v269_v20, 0.0 }
  0xa4   :  { %127 = vadd.xlane.f32.xlu0 %v126_v21  ;;  %108 = vadd.xlane.f32.xlu1 %v107_v22 }
  0xa8   :  { %130 = vadd.xlane.f32.xlu0 %v129_v25 }
  0xac   :  { %141 = vadd.xlane.f32.xlu0 %v140_v27 }
  0xb0   :  { %144 = vadd.xlane.f32.xlu0 %v143_v29 }
 0x129   :  { %v106_v30 = vpop.xlane.xlu0 %105 }
 0x12a   :  { %270 = vlog2.f32 %v106_v30 }
 0x12d   :  { %v109_v31 = vpop.xlane.xlu1 %108  ;;  %v128_v32 = vpop.xlane.xlu0 %127 }
 0x12e   :  { %272 = vlog2.f32 %v109_v31 }
 0x131   :  { %v131_v33 = vpop.xlane.xlu0 %130 }
 0x135   :  { %v142_v34 = vpop.xlane.xlu0 %141 }
 0x136   :  { %v158_v41 = vsub.f32 0.0, %v142_v34  ;;  %v185_v50 = vsel %vm167_vm3, %v142_v34, 0.0 }
 0x137   :  { %v271_v35 = vpop.eup %270 }
 0x138   :  { %v111_v36 = vmul.f32 0.6931472, %v271_v35 }
 0x139   :  { %v145_v39 = vpop.xlane.xlu0 %144 }
 0x13a   :  { %v146_v37 = vsub.f32 %v128_v32, %v111_v36  ;;  %v159_v44 = vsub.f32 0.0, %v145_v39  ;;  %v186_v49 = vsel %vm167_vm3, %v145_v39, 0.0 }
 0x13b   :  { %v273_v38 = vpop.eup %272  ;;  %v187_v51 = vadd.f32 %v186_v49, %v185_v50 }
 0x13c   :  { %v113_v40 = vmul.f32 0.6931472, %v273_v38  ;;  %v160_v43 = vmul.f32 %v158_v41, %v146_v37 }
 0x13e   :  { %v147_v42 = vsub.f32 %v131_v33, %v113_v40  ;;  %v168_v46 = vsel %vm167_vm3, %v160_v43, 0.0 }
 0x140   :  { %v161_v45 = vmul.f32 %v159_v44, %v147_v42 }
 0x142   :  { %v169_v47 = vsel %vm167_vm3, %v161_v45, 0.0 }
 0x143   :  { %v170_v48 = vadd.f32 %v169_v47, %v168_v46 }
 0x145   :  { %171 = vadd.xlane.f32.xlu0 %v170_v48 }
 0x149   :  { %188 = vadd.xlane.f32.xlu0 %v187_v51 }
 0x1ce   :  { %v172_v53 = vpop.xlane.xlu0 %171 }
 0x1cf   :  { %v173_v54 = vrot.slane %v172_v53, 4 }
 0x1d1   :  { %v174_v55 = vadd.f32 %v173_v54, %v172_v53 }
 0x1d2   :  { %v189_v56 = vpop.xlane.xlu0 %188 }
 0x1d3   :  { %v175_v57 = vrot.slane %v174_v55, 2  ;;  %v190_v58 = vrot.slane %v189_v56, 4 }
 0x1d5   :  { %v191_v59 = vadd.f32 %v190_v58, %v189_v56  ;;  %v176_v60 = vadd.f32 %v175_v57, %v174_v55 }
 0x1d7   :  { %v192_v61 = vrot.slane %v191_v59, 2  ;;  %v177_v62 = vrot.slane %v176_v60, 1 }
 0x1d9   :  { %v178_v63 = vadd.f32 %v177_v62, %v176_v60  ;;  %v193_v0 = vadd.f32 %v192_v61, %v191_v59 }
 0x1db   :  { %257 = vpush %v178_v63  ;;  %v194_v1 = vrot.slane %v193_v0, 1 }
 0x1dd   :  { %v195_v2 = vadd.f32 %v194_v1, %v193_v0 }
 0x1df   :  { %259 = vpush %v195_v2 }
 0x20c   :  { %s258_s2 = spop %257 }
 0x20d   :  { %v180_v4 = vstv %s258_s2 }
 0x20e   :  { %v181_v5 = vadd.f32 %v180_v4, %v166_v3 }
 0x210   :  { %183 = vst.msk [vmem:[#allocation2] sm:$0x1] %vm83_vm4, %v181_v5  ;;  %s260_s20 = spop %259 }
 0x211   :  { %v197_v7 = vstv %s260_s20 }
 0x212   :  { %v198_v8 = vadd.f32 %v197_v7, %v184_v6 }
 0x214   :  { %199 = vst.msk [vmem:[#allocation3] sm:$0x1] %vm83_vm4, %v198_v8 }
 0x217   :  { %v256_v9 = vld [vmem:[#allocation2] ss:$0 sm:$0xff] }
 0x218   :  { %223 = vperm.xlu1 %264, %v256_v9  }
 0x21b   :  { %v255_v10 = vld [vmem:[#allocation3] ss:$0 sm:$0xff] }
 0x21c   :  { %213 = vperm.xlu0 %265, %v255_v10  }
 0x293   :  { %v224_v14 = vpop.permute.xlu1 %223 }
 0x297   :  { %v214_v12 = vpop.permute.xlu0 %213 }
 0x298   :  { %v216_v15 = vsel %vm205_vm5, %v214_v12, 0.0 }
 0x299   :  { %v226_v16 = vsel %vm203_vm6, %v224_v14, %v216_v15 }
 0x29a   :  { %227 = vst [vmem:[#allocation4] sm:$0xff] %v226_v16 }
 0x29b   :  { %285 = shalt.err (!%p282_p4)
}
 0x29c   :  { %237 = dma.vmem_to_hbm [thread:$0]  %s235_s22, 128, %s356_s3, [#allocation5]  }
 0x29d   :  { %294 = dma.done.wait [#allocation5], 128  }
 0x29e   :  { %295 = vsyncadd [#allocation5], 4294967168 }
 0x29f   :  { %241 = vsyncpa [#allocation5], 1 }

</bundles_post_ra>
